<compile_context>
chip_gen: v7x
topology: tpu7x:2x2x1
jax: 0.10.0
libtpu: 0.0.40
codegen_flags: <defaults>
</compile_context>

<pallas_src>
import math

import jax
import jax.numpy as jnp
from jax.experimental import pallas as pl
from jax.experimental.pallas import tpu as pltpu


def _round_up(x, m):
    return -(-x // m) * m


def _physical_vmem_bytes():
    """Best-effort physical VMEM size; falls back to the v7x minimum (safe everywhere)."""
    try:
        info = pltpu.get_tpu_info()
        for name in ("vmem_capacity_bytes", "vmem_size_bytes", "vmem_bytes"):
            v = getattr(info, name, None)
            if v:
                return int(v)
    except Exception:
        pass
    return 64 * 1024 * 1024


def _dice_bce_kernel(p_ref, t_ref, inter_out, sum_out, bce_out):
    """Streams one (R, tn) tile and folds it into (R, 1) per-row partial sums.

    The output blocks are revisited across the inner ("arbitrary") reduction
    axis, so they stay resident in VMEM and act as the accumulators — no
    full-tile scratch, so the steady state is 2 input vreg loads + VPU/EUP
    work plus one cross-lane (XLU) reduce per quantity per step.
    """
    @pl.when(pl.program_id(1) == 0)
    def _init():
        inter_out[...] = jnp.zeros_like(inter_out)
        sum_out[...] = jnp.zeros_like(sum_out)
        bce_out[...] = jnp.zeros_like(bce_out)

    p = p_ref[...].astype(jnp.float32)   # raw probabilities
    t = t_ref[...].astype(jnp.float32)   # targets in [0, 1]

    # NOTE: the reference swaps arguments — dice_loss(preds, target) calls
    # dice(preds, target) against the signature dice(target, preds), so the
    # 0.5 threshold lands on the *target* while raw preds stay unthresholded.
    tb = (t > 0.5).astype(jnp.float32)

    # tb in {0,1} and p in [0,1]  =>  torch.abs() is the identity; dropped.
    inter_out[...] += jnp.sum(tb * p, axis=-1, keepdims=True)   # dice numerator
    sum_out[...] += jnp.sum(tb + p, axis=-1, keepdims=True)     # dice denominator

    # F.binary_cross_entropy (mean reduction) with PyTorch's log clamp at -100,
    # factored as -(t*(log p - log(1-p)) + log(1-p)) to save a multiply.
    log_p = jnp.maximum(jnp.log(p), -100.0)
    log_1mp = jnp.maximum(jnp.log(1.0 - p), -100.0)
    bce_out[...] += jnp.sum(-(t * (log_p - log_1mp) + log_1mp),
                            axis=-1, keepdims=True)


def dice_bce_loss(preds, target, *, max_lanes=32768, assume_binary_target=False):
    """DiceBCELoss.forward(preds, target) -> scalar float32."""
    assert preds.shape == target.shape
    B = preds.shape[0]
    N = math.prod(preds.shape[1:])

    # Stream native dtypes; cast to f32 tile-by-tile inside the kernel.
    p2 = preds.reshape(B, N)
    t2 = target.reshape(B, N)
    if assume_binary_target and t2.dtype.itemsize > 2:
        # Exact for hard {0,1} masks; halves the target HBM stream.
        t2 = t2.astype(jnp.bfloat16)

    # Fold part of N into the sublane/row dim when B < 8 so every vreg carries
    # live data; for B >= 8, B % 8 != 0 pad rows with zeros (exact for all sums).
    k = (8 // math.gcd(B, 8)) if B < 8 else 1
    Nk = _round_up(N, k)
    if Nk != N:
        # Zero padding is exact: p=0, t=0 contributes 0 to all three sums.
        p2 = jnp.pad(p2, ((0, 0), (0, Nk - N)))
        t2 = jnp.pad(t2, ((0, 0), (0, Nk - N)))
    R0 = B * k
    Nf = Nk // k
    p3 = p2.reshape(R0, Nf)
    t3 = t2.reshape(R0, Nf)
    R = _round_up(R0, 8)
    if R != R0:
        p3 = jnp.pad(p3, ((0, R - R0), (0, 0)))
        t3 = jnp.pad(t3, ((0, R - R0), (0, 0)))

    # R- and generation-aware lane tile: largest multiple of 128 such that the
    # two double-buffered input tiles fit in ~80% of the scoped VMEM budget.
    vmem_phys = _physical_vmem_bytes()       # 64 MiB (v7x) / 128 MiB (v5e/v6e)
    vmem_limit = (vmem_phys * 3) // 4        # 48 MiB on v7x, 96 MiB on v5e/v6e
    in_col_bytes = R * (p3.dtype.itemsize + t3.dtype.itemsize) * 2   # 2-deep pipeline
    tn_cap = max(128, (int(vmem_limit * 0.8) // in_col_bytes) // 128 * 128)
    tn = min(_round_up(Nf, 128), tn_cap, max(128, max_lanes))

    # Split the reduction range into P independent chunks so v7x's second
    # TensorCore is used (dimension_semantics "parallel" on the leading axis).
    steps_total = -(-Nf // tn)
    P = 2 if steps_total >= 2 else 1
    steps_per_chunk = -(-steps_total // P)
    Nf_pad = P * steps_per_chunk * tn
    if Nf_pad != Nf:
        p3 = jnp.pad(p3, ((0, 0), (0, Nf_pad - Nf)))
        t3 = jnp.pad(t3, ((0, 0), (0, Nf_pad - Nf)))

    inter_r, sum_r, bce_r = pl.pallas_call(
        _dice_bce_kernel,
        out_shape=(
            jax.ShapeDtypeStruct((P, R, 1), jnp.float32),
            jax.ShapeDtypeStruct((P, R, 1), jnp.float32),
            jax.ShapeDtypeStruct((P, R, 1), jnp.float32),
        ),
        grid_spec=pltpu.PrefetchScalarGridSpec(
            num_scalar_prefetch=0,
            grid=(P, steps_per_chunk),
            in_specs=[
                pl.BlockSpec((R, tn), lambda c, i: (0, c * steps_per_chunk + i)),
                pl.BlockSpec((R, tn), lambda c, i: (0, c * steps_per_chunk + i)),
            ],
            out_specs=(
                pl.BlockSpec((None, R, 1), lambda c, i: (c, 0, 0)),
                pl.BlockSpec((None, R, 1), lambda c, i: (c, 0, 0)),
                pl.BlockSpec((None, R, 1), lambda c, i: (c, 0, 0)),
            ),
        ),
        compiler_params=pltpu.CompilerParams(
            dimension_semantics=("parallel", "arbitrary"),
            vmem_limit_bytes=int(vmem_limit),
        ),
    )(p3, t3)

    # Tiny O(P*R) final combine in plain JAX: merge chunks, regroup folded rows.
    inter_rows = jnp.sum(inter_r, axis=0)[:R0, 0]
    sum_rows = jnp.sum(sum_r, axis=0)[:R0, 0]
    inter_b = inter_rows.reshape(B, k).sum(axis=1)
    sum_b = sum_rows.reshape(B, k).sum(axis=1)
    metric = jnp.mean(2.0 * inter_b / sum_b)
    dice_coef_loss = (1.0 - metric) * 1.0            # smooth=1 (multiplicative, per ref)
    bce = jnp.sum(bce_r) / (B * N)                   # mean over true element count
    return dice_coef_loss + bce


def _reference(preds, target):
    """Plain-JAX transcription of the PyTorch module (sanity check only)."""
    B = preds.shape[0]
    p = preds.reshape(B, -1).astype(jnp.float32)
    t = target.reshape(B, -1).astype(jnp.float32)
    tb = (t > 0.5).astype(jnp.float32)
    inter = jnp.sum(jnp.abs(tb * p), axis=1)
    ssum = jnp.sum(jnp.abs(tb) + jnp.abs(p), axis=1)
    metric = jnp.mean(2.0 * inter / ssum)
    dcl = (1.0 - metric) * 1.0
    log_p = jnp.maximum(jnp.log(p), -100.0)
    log_1mp = jnp.maximum(jnp.log(1.0 - p), -100.0)
    bce = jnp.mean(-(t * log_p + (1.0 - t) * log_1mp))
    return dcl + bce


if __name__ == "__main__":
    key = jax.random.PRNGKey(0)
    kp, kt = jax.random.split(key)
    B, C, H, W = 2, 4, 16, 16
    # preds must be valid probabilities for binary_cross_entropy
    preds = jax.nn.sigmoid(jax.random.normal(kp, (B, C, H, W), jnp.float32))
    target = (jax.random.uniform(kt, (B, C, H, W)) > 0.5).astype(jnp.float32)

    loss = dice_bce_loss(preds, target, assume_binary_target=True)
    jax.block_until_ready(loss)

    ref = _reference(preds, target)
    assert abs(float(loss) - float(ref)) < 1e-4, (float(loss), float(ref))
    print("KERNEL_OK")
</pallas_src>

<mosaic_0001>
module attributes {stable_mosaic.version = 11 : i64} {
  func.func @_dice_bce_kernel(%arg0: i32, %arg1: i32, %arg2: memref<8x256xf32, #tpu.memory_space<vmem>>, %arg3: memref<8x256xbf16, #tpu.memory_space<vmem>>, %arg4: memref<1x8x1xf32, #tpu.memory_space<vmem>>, %arg5: memref<1x8x1xf32, #tpu.memory_space<vmem>>, %arg6: memref<1x8x1xf32, #tpu.memory_space<vmem>>) attributes {dimension_semantics = [#tpu.dimension_semantics<parallel>, #tpu.dimension_semantics<arbitrary>], iteration_bounds = array<i64: 1, 1>, scalar_prefetch = 0 : i64, scratch_operands = 0 : i64, tpu.core_type = #tpu.core_type<tc>, window_params = [{transform_indices = @transform_0, window_bounds = array<i64: 8, 256>}, {transform_indices = @transform_1, window_bounds = array<i64: 8, 256>}, {transform_indices = @transform_2, window_bounds = array<i64: 1, 8, 1>}, {transform_indices = @transform_3, window_bounds = array<i64: 1, 8, 1>}, {transform_indices = @transform_4, window_bounds = array<i64: 1, 8, 1>}]} {
    %c0_i32 = arith.constant 0 : i32
    %0 = arith.cmpi eq, %arg1, %c0_i32 : i32
    %1 = arith.extui %0 : i1 to i32
    %c0_i32_0 = arith.constant 0 : i32
    %2 = arith.cmpi ne, %1, %c0_i32_0 : i32
    scf.if %2 {
      %cst_29 = arith.constant 0.000000e+00 : f32
      %49 = vector.broadcast %cst_29 : f32 to vector<8x1xf32>
      %c0_30 = arith.constant 0 : index
      %c0_31 = arith.constant 0 : index
      %c0_32 = arith.constant 0 : index
      %50 = vector.load %arg4[%c0_30, %c0_31, %c0_32] : memref<1x8x1xf32, #tpu.memory_space<vmem>>, vector<1x8x1xf32>
      %51 = vector.shape_cast %50 : vector<1x8x1xf32> to vector<8x1xf32>
      %52 = vector.shape_cast %49 : vector<8x1xf32> to vector<1x8x1xf32>
      tpu.vector_store %arg4[%c0_30, %c0_31, %c0_32], %52 {strides = array<i32>} : memref<1x8x1xf32, #tpu.memory_space<vmem>>, vector<1x8x1xf32>,
      %cst_33 = arith.constant 0.000000e+00 : f32
      %53 = vector.broadcast %cst_33 : f32 to vector<8x1xf32>
      %c0_34 = arith.constant 0 : index
      %c0_35 = arith.constant 0 : index
      %c0_36 = arith.constant 0 : index
      %54 = vector.load %arg5[%c0_34, %c0_35, %c0_36] : memref<1x8x1xf32, #tpu.memory_space<vmem>>, vector<1x8x1xf32>
      %55 = vector.shape_cast %54 : vector<1x8x1xf32> to vector<8x1xf32>
      %56 = vector.shape_cast %53 : vector<8x1xf32> to vector<1x8x1xf32>
      tpu.vector_store %arg5[%c0_34, %c0_35, %c0_36], %56 {strides = array<i32>} : memref<1x8x1xf32, #tpu.memory_space<vmem>>, vector<1x8x1xf32>,
      %cst_37 = arith.constant 0.000000e+00 : f32
      %57 = vector.broadcast %cst_37 : f32 to vector<8x1xf32>
      %c0_38 = arith.constant 0 : index
      %c0_39 = arith.constant 0 : index
      %c0_40 = arith.constant 0 : index
      %58 = vector.load %arg6[%c0_38, %c0_39, %c0_40] : memref<1x8x1xf32, #tpu.memory_space<vmem>>, vector<1x8x1xf32>
      %59 = vector.shape_cast %58 : vector<1x8x1xf32> to vector<8x1xf32>
      %60 = vector.shape_cast %57 : vector<8x1xf32> to vector<1x8x1xf32>
      tpu.vector_store %arg6[%c0_38, %c0_39, %c0_40], %60 {strides = array<i32>} : memref<1x8x1xf32, #tpu.memory_space<vmem>>, vector<1x8x1xf32>,
    } else {
    }
    %c0 = arith.constant 0 : index
    %c0_1 = arith.constant 0 : index
    %3 = vector.load %arg2[%c0, %c0_1] : memref<8x256xf32, #tpu.memory_space<vmem>>, vector<8x256xf32>
    %c0_2 = arith.constant 0 : index
    %c0_3 = arith.constant 0 : index
    %4 = vector.load %arg3[%c0_2, %c0_3] : memref<8x256xbf16, #tpu.memory_space<vmem>>, vector<8x256xbf16>
    %5 = arith.extf %4 : vector<8x256xbf16> to vector<8x256xf32>
    %cst = arith.constant 5.000000e-01 : f32
    %6 = vector.broadcast %cst : f32 to vector<8x256xf32>
    %7 = arith.cmpf ogt, %5, %6 : vector<8x256xf32>
    %8 = arith.extui %7 : vector<8x256xi1> to vector<8x256xi32>
    %9 = arith.sitofp %8 : vector<8x256xi32> to vector<8x256xf32>
    %c0_4 = arith.constant 0 : index
    %c0_5 = arith.constant 0 : index
    %c0_6 = arith.constant 0 : index
    %10 = vector.load %arg4[%c0_4, %c0_5, %c0_6] : memref<1x8x1xf32, #tpu.memory_space<vmem>>, vector<1x8x1xf32>
    %11 = vector.shape_cast %10 : vector<1x8x1xf32> to vector<8x1xf32>
    %12 = arith.mulf %9, %3 : vector<8x256xf32>
    %cst_7 = arith.constant dense<0.000000e+00> : vector<8xf32>
    %13 = vector.multi_reduction <add>, %12, %cst_7 [1] : vector<8x256xf32> to vector<8xf32>
    %14 = vector.shape_cast %13 : vector<8xf32> to vector<8x1xf32>
    %15 = arith.addf %11, %14 : vector<8x1xf32>
    %c0_8 = arith.constant 0 : index
    %c0_9 = arith.constant 0 : index
    %c0_10 = arith.constant 0 : index
    %16 = vector.load %arg4[%c0_8, %c0_9, %c0_10] : memref<1x8x1xf32, #tpu.memory_space<vmem>>, vector<1x8x1xf32>
    %17 = vector.shape_cast %16 : vector<1x8x1xf32> to vector<8x1xf32>
    %18 = vector.shape_cast %15 : vector<8x1xf32> to vector<1x8x1xf32>
    tpu.vector_store %arg4[%c0_8, %c0_9, %c0_10], %18 {strides = array<i32>} : memref<1x8x1xf32, #tpu.memory_space<vmem>>, vector<1x8x1xf32>,
    %c0_11 = arith.constant 0 : index
    %c0_12 = arith.constant 0 : index
    %c0_13 = arith.constant 0 : index
    %19 = vector.load %arg5[%c0_11, %c0_12, %c0_13] : memref<1x8x1xf32, #tpu.memory_space<vmem>>, vector<1x8x1xf32>
    %20 = vector.shape_cast %19 : vector<1x8x1xf32> to vector<8x1xf32>
    %21 = arith.addf %9, %3 : vector<8x256xf32>
    %cst_14 = arith.constant dense<0.000000e+00> : vector<8xf32>
    %22 = vector.multi_reduction <add>, %21, %cst_14 [1] : vector<8x256xf32> to vector<8xf32>
    %23 = vector.shape_cast %22 : vector<8xf32> to vector<8x1xf32>
    %24 = arith.addf %20, %23 : vector<8x1xf32>
    %c0_15 = arith.constant 0 : index
    %c0_16 = arith.constant 0 : index
    %c0_17 = arith.constant 0 : index
    %25 = vector.load %arg5[%c0_15, %c0_16, %c0_17] : memref<1x8x1xf32, #tpu.memory_space<vmem>>, vector<1x8x1xf32>
    %26 = vector.shape_cast %25 : vector<1x8x1xf32> to vector<8x1xf32>
    %27 = vector.shape_cast %24 : vector<8x1xf32> to vector<1x8x1xf32>
    tpu.vector_store %arg5[%c0_15, %c0_16, %c0_17], %27 {strides = array<i32>} : memref<1x8x1xf32, #tpu.memory_space<vmem>>, vector<1x8x1xf32>,
    %28 = math.log %3 : vector<8x256xf32>
    %cst_18 = arith.constant -1.000000e+02 : f32
    %29 = vector.broadcast %cst_18 : f32 to vector<8x256xf32>
    %30 = arith.maximumf %28, %29 : vector<8x256xf32>
    %cst_19 = arith.constant 1.000000e+00 : f32
    %31 = vector.broadcast %cst_19 : f32 to vector<8x256xf32>
    %32 = arith.subf %31, %3 : vector<8x256xf32>
    %33 = math.log %32 : vector<8x256xf32>
    %cst_20 = arith.constant -1.000000e+02 : f32
    %34 = vector.broadcast %cst_20 : f32 to vector<8x256xf32>
    %35 = arith.maximumf %33, %34 : vector<8x256xf32>
    %c0_21 = arith.constant 0 : index
    %c0_22 = arith.constant 0 : index
    %c0_23 = arith.constant 0 : index
    %36 = vector.load %arg6[%c0_21, %c0_22, %c0_23] : memref<1x8x1xf32, #tpu.memory_space<vmem>>, vector<1x8x1xf32>
    %37 = vector.shape_cast %36 : vector<1x8x1xf32> to vector<8x1xf32>
    %38 = arith.subf %30, %35 : vector<8x256xf32>
    %39 = arith.mulf %5, %38 : vector<8x256xf32>
    %40 = arith.addf %39, %35 : vector<8x256xf32>
    %cst_24 = arith.constant 0.000000e+00 : f32
    %41 = vector.broadcast %cst_24 : f32 to vector<8x256xf32>
    %42 = arith.subf %41, %40 : vector<8x256xf32>
    %cst_25 = arith.constant dense<0.000000e+00> : vector<8xf32>
    %43 = vector.multi_reduction <add>, %42, %cst_25 [1] : vector<8x256xf32> to vector<8xf32>
    %44 = vector.shape_cast %43 : vector<8xf32> to vector<8x1xf32>
    %45 = arith.addf %37, %44 : vector<8x1xf32>
    %c0_26 = arith.constant 0 : index
    %c0_27 = arith.constant 0 : index
    %c0_28 = arith.constant 0 : index
    %46 = vector.load %arg6[%c0_26, %c0_27, %c0_28] : memref<1x8x1xf32, #tpu.memory_space<vmem>>, vector<1x8x1xf32>
    %47 = vector.shape_cast %46 : vector<1x8x1xf32> to vector<8x1xf32>
    %48 = vector.shape_cast %45 : vector<8x1xf32> to vector<1x8x1xf32>
    tpu.vector_store %arg6[%c0_26, %c0_27, %c0_28], %48 {strides = array<i32>} : memref<1x8x1xf32, #tpu.memory_space<vmem>>, vector<1x8x1xf32>,
    return
  }
  func.func @transform_0(%arg0: i32, %arg1: i32) -> (i32, i32) {
    %c1_i32 = arith.constant 1 : i32
    %0 = arith.muli %arg0, %c1_i32 : i32
    %1 = arith.addi %0, %arg1 : i32
    %c0_i32 = arith.constant 0 : i32
    %c0_i32_0 = arith.constant 0 : i32
    return %c0_i32, %1 : i32, i32
  }
  func.func @transform_1(%arg0: i32, %arg1: i32) -> (i32, i32) {
    %c1_i32 = arith.constant 1 : i32
    %0 = arith.muli %arg0, %c1_i32 : i32
    %1 = arith.addi %0, %arg1 : i32
    %c0_i32 = arith.constant 0 : i32
    %c0_i32_0 = arith.constant 0 : i32
    return %c0_i32, %1 : i32, i32
  }
  func.func @transform_2(%arg0: i32, %arg1: i32) -> (i32, i32, i32) {
    %c0_i32 = arith.constant 0 : i32
    %c0_i32_0 = arith.constant 0 : i32
    %c0_i32_1 = arith.constant 0 : i32
    return %arg0, %c0_i32, %c0_i32_0 : i32, i32, i32
  }
  func.func @transform_3(%arg0: i32, %arg1: i32) -> (i32, i32, i32) {
    %c0_i32 = arith.constant 0 : i32
    %c0_i32_0 = arith.constant 0 : i32
    %c0_i32_1 = arith.constant 0 : i32
    return %arg0, %c0_i32, %c0_i32_0 : i32, i32, i32
  }
  func.func @transform_4(%arg0: i32, %arg1: i32) -> (i32, i32, i32) {
    %c0_i32 = arith.constant 0 : i32
    %c0_i32_0 = arith.constant 0 : i32
    %c0_i32_1 = arith.constant 0 : i32
    return %arg0, %c0_i32, %c0_i32_0 : i32, i32, i32
  }
}

</mosaic_0001>

<bundles_post_ra>
// kernel: tpu_custom_call.1
= control target key start
LH: loop header
LB: loop body
LE: loop exit
PB: predicated region body
PF: predicated region fallthrough
CT: control target
= control target key end

     0   :  { %10 = vsyncpa [#allocation3], 0  ;;  %s274_s0 = inlined_call_operand.hbm [shape: f32[8,256], index: 0, kind: input, shape index: {}]   ;;  %s275_s1 = inlined_call_operand.hbm [shape: bf16[8,256], index: 1, kind: input, shape index: {}]   ;;  %s276_s2 = inlined_call_operand.vmem [shape: f32[1,8,1], index: 2, kind: output, shape index: {0}]   ;;  %s277_s3 = inlined_call_operand.vmem [shape: f32[1,8,1], index: 3, kind: output, shape index: {1}]   ;;  %s278_s4 = inlined_call_operand.vmem [shape: f32[1,8,1], index: 4, kind: output, shape index: {2}]  }
   0x1   :  { %11 = vsyncpa [#allocation5], 0  ;;  %s189_s15 = smov [#allocation2]   ;;  %s190_s17 = smov [#allocation4]  }
   0x2   :  { %s22_s16 = sshll.u32 %s189_s15, 4  ;;  %s36_s18 = sshll.u32 %s190_s17, 4  ;;  %s23_s16 = int_to_ptr.vmem [resolvable:$true] %s22_s16  ;;  %s37_s18 = int_to_ptr.vmem [resolvable:$true] %s36_s18 }
   0x3   :  { %s141_s21 = scalar_lea.hbm %s274_s0, 256 }
   0x4   :  { %p142_p0 = scmp.ne.s32.totalorder %s274_s0, %s141_s21  ;;  %p145_p1 = scmp.lt.u32.totalorder %s141_s21, %s274_s0 }
   0x6   :  { %p147_p2 = pnand %p145_p1, %p142_p0 }
   0x8   :  { %150 = shalt.err (!%p147_p2)
}
   0x9   :  { %s151_s26 = scalar_lea.vmem %s23_s16, 256  ;;  %p156_p4 = scmp.lt.s32.totalorder %s23_s16, %s23_s16 }
   0xa   :  { %p152_p3 = scmp.ne.s32.totalorder %s23_s16, %s151_s26  ;;  %p157_p5 = scmp.lt.s32.totalorder %s151_s26, %s151_s26 }
   0xc   :  { %p158_p6 = por %p157_p5, %p156_p4 }
   0xe   :  { %p159_p7 = pnand %p158_p6, %p152_p3 }
  0x10   :  { %162 = shalt.err (!%p159_p7)
}
  0x11   :  { %25 = dma.hbm_to_vmem [thread:$0]  %s274_s0, 256, %s23_s16, [#allocation3]  }
  0x12   :  { %s163_s5 = scalar_lea.hbm %s275_s1, 128 }
  0x13   :  { %p164_p8 = scmp.ne.s32.totalorder %s275_s1, %s163_s5  ;;  %p167_p9 = scmp.lt.u32.totalorder %s163_s5, %s275_s1 }
  0x15   :  { %p169_p10 = pnand %p167_p9, %p164_p8 }
  0x17   :  { %172 = shalt.err (!%p169_p10)
}
  0x18   :  { %s173_s10 = scalar_lea.vmem %s37_s18, 128  ;;  %p178_p12 = scmp.lt.s32.totalorder %s37_s18, %s37_s18 }
  0x19   :  { %p174_p11 = scmp.ne.s32.totalorder %s37_s18, %s173_s10  ;;  %p179_p13 = scmp.lt.s32.totalorder %s173_s10, %s173_s10 }
  0x1b   :  { %p180_p0 = por %p179_p13, %p178_p12 }
  0x1d   :  { %p181_p1 = pnand %p180_p0, %p174_p11 }
  0x1f   :  { %184 = shalt.err (!%p181_p1)
}
  0x20   :  { %39 = dma.hbm_to_vmem [thread:$0]  %s275_s1, 128, %s37_s18, [#allocation5]  }
  0x21   :  { %185 = dma.done.wait [#allocation3], 256  }
  0x22   :  { %186 = vsyncadd [#allocation3], 4294967040 }
  0x23   :  { %187 = dma.done.wait [#allocation5], 128  }
  0x24   :  { %188 = vsyncadd [#allocation5], 4294967168  ;;  %vm54_vm0 = vcmask 7168   ;;  %v191_v0 = vmov 0.0   ;;  %v58_v1 = vld [vmem:[#allocation2] sm:$0xff]  ;;  %v59_v2 = vld [vmem:[#allocation2 + $0x8] sm:$0xff] }
  0x25   :  { %55 = vst.msk [vmem:[%s276_s2] sm:$0xff] %vm54_vm0, %v191_v0  ;;  %56 = vst.msk [vmem:[%s277_s3] sm:$0xff] %vm54_vm0, %v191_v0  ;;  %v60_v3 = vld [vmem:[#allocation4] sm:$0xff]  ;;  %133 = vlog2.f32 %v58_v1  ;;  %v92_v6 = vsub.f32 1.0, %v58_v1  ;;  %v93_v7 = vsub.f32 1.0, %v59_v2 }
  0x26   :  { %57 = vst.msk [vmem:[%s278_s4] sm:$0xff] %vm54_vm0, %v191_v0  ;;  %v61_v4 = vunpack.c.l.bf16 %v60_v3  ;;  %v62_v5 = vunpack.c.h.bf16 %v60_v3  ;;  %135 = vlog2.f32 %v59_v2 }
  0x27   :  { %137 = vlog2.f32 %v92_v6 }
  0x28   :  { %vm63_vm1 = vcmp.gt.f32.partialorder %v61_v4, 0.5  ;;  %vm64_vm2 = vcmp.gt.f32.partialorder %v62_v5, 0.5  ;;  %139 = vlog2.f32 %v93_v7 }
  0x29   :  { %v128_v8 = vsel %vm63_vm1, 1.0, %v191_v0  ;;  %v129_v9 = vsel %vm64_vm2, 1.0, %v191_v0 }
  0x2a   :  { %v70_v10 = vmul.f32 %v128_v8, %v58_v1  ;;  %v71_v11 = vmul.f32 %v129_v9, %v59_v2  ;;  %v79_v12 = vadd.f32 %v128_v8, %v58_v1  ;;  %v80_v13 = vadd.f32 %v129_v9, %v59_v2 }
  0x2c   :  { %v72_v14 = vadd.f32 %v71_v11, %v70_v10  ;;  %v81_v15 = vadd.f32 %v80_v13, %v79_v12  ;;  %v69_v37 = vld [vmem:[%s276_s2] sm:$0xff] }
  0x2d   :  { %v78_v40 = vld [vmem:[%s277_s3] sm:$0xff] }
  0x2e   :  { %73 = vadd.xlane.f32.xlu0 %v72_v14  ;;  %v100_v43 = vld [vmem:[%s278_s4] sm:$0xff] }
  0x2f   :  { %v134_v16 = vpop.eup %133 }
  0x30   :  { %v136_v17 = vpop.eup %135  ;;  %v87_v18 = vmul.f32 0.6931472, %v134_v16 }
  0x31   :  { %v138_v19 = vpop.eup %137  ;;  %v89_v20 = vmul.f32 0.6931472, %v136_v17 }
  0x32   :  { %82 = vadd.xlane.f32.xlu0 %v81_v15  ;;  %v140_v21 = vpop.eup %139  ;;  %v90_v22 = vmax.f32 %v87_v18, -100.0  ;;  %v95_v23 = vmul.f32 0.6931472, %v138_v19 }
  0x33   :  { %v91_v24 = vmax.f32 %v89_v20, -100.0  ;;  %v97_v25 = vmul.f32 0.6931472, %v140_v21 }
  0x34   :  { %v98_v26 = vmax.f32 %v95_v23, -100.0 }
  0x35   :  { %v99_v27 = vmax.f32 %v97_v25, -100.0 }
  0x36   :  { %v101_v28 = vsub.f32 %v90_v22, %v98_v26 }
  0x37   :  { %v102_v29 = vsub.f32 %v91_v24, %v99_v27 }
  0x38   :  { %v103_v30 = vmul.f32 %v101_v28, %v61_v4 }
  0x39   :  { %v104_v31 = vmul.f32 %v102_v29, %v62_v5 }
  0x3a   :  { %v105_v32 = vadd.f32 %v103_v30, %v98_v26 }
  0x3b   :  { %v106_v33 = vadd.f32 %v104_v31, %v99_v27 }
  0x3c   :  { %v107_v34 = vsub.f32 0.0, %v105_v32 }
  0x3d   :  { %v108_v35 = vsub.f32 0.0, %v106_v33 }
  0x3f   :  { %v109_v36 = vadd.f32 %v108_v35, %v107_v34 }
  0x41   :  { %110 = vadd.xlane.f32.xlu1 %v109_v36 }
  0xbb   :  { %v74_v38 = vpop.xlane.xlu0 %73 }
  0xbc   :  { %v75_v39 = vadd.f32 %v74_v38, %v69_v37 }
  0xbe   :  { %77 = vst.msk [vmem:[%s276_s2] sm:$0xff] %vm54_vm0, %v75_v39 }
  0xbf   :  { %v83_v41 = vpop.xlane.xlu0 %82 }
  0xc0   :  { %v84_v42 = vadd.f32 %v83_v41, %v78_v40 }
  0xc2   :  { %85 = vst.msk [vmem:[%s277_s3] sm:$0xff] %vm54_vm0, %v84_v42 }
  0xce   :  { %v111_v44 = vpop.xlane.xlu1 %110 }
  0xcf   :  { %v112_v45 = vadd.f32 %v111_v44, %v100_v43 }
  0xd1   :  { %113 = vst.msk [vmem:[%s278_s4] sm:$0xff] %vm54_vm0, %v112_v45 }
  0xd2   :  { %126 = vsyncpa [#allocation3], 1 }
  0xd3   :  { %127 = vsyncpa [#allocation5], 1 }

</bundles_post_ra>
